<compile_context>
chip_gen: v6e
topology: v6e:2x2x1
jax: 0.10.0
libtpu: 0.0.40
codegen_flags: <defaults>
</compile_context>

<pallas_src>
import math

import jax
import jax.numpy as jnp
from jax.experimental import pallas as pl
from jax.experimental.pallas import tpu as pltpu

_LANE = 128


def _layerscale_kernel(x_ref, gamma_ref, o_ref):
    # x_ref: (tile_rows, D); gamma_ref: (1, D) broadcast over rows.
    # Multiply in f32, store in the output dtype (one VPU mul per vreg).
    x = x_ref[...].astype(jnp.float32)
    g = gamma_ref[...].astype(jnp.float32)
    o_ref[...] = (x * g).astype(o_ref.dtype)


def _sublane_pack(dtype):
    # Rows per sublane pack: 8 for 32-bit, 16 for 16-bit, 32 for 8-bit dtypes.
    return 8 * (4 // jnp.dtype(dtype).itemsize)


def _tpu_memory_profile():
    """(vmem_capacity_bytes, num_tensorcores) with conservative fallbacks."""
    vmem_cap = 64 << 20  # conservative: v7x per-TC VMEM
    num_tc = None
    try:
        info = pltpu.get_tpu_info()
        for name in ("vmem_capacity_bytes", "vmem_bytes", "vmem_size_bytes"):
            v = getattr(info, name, None)
            if v is not None:
                try:
                    v = int(v)
                except (TypeError, ValueError):
                    continue
                if v > 0:
                    vmem_cap = v
                    break
        for name in ("num_tensorcores", "tensorcore_count", "num_cores"):
            v = getattr(info, name, None)
            if v is not None:
                try:
                    v = int(v)
                except (TypeError, ValueError):
                    continue
                if v > 0:
                    num_tc = v
                    break
    except Exception:
        pass
    if num_tc is None:
        # Heuristic: 64 MiB-per-TC parts (v7x) have 2 TCs/chip; 128 MiB parts have 1.
        num_tc = 2 if vmem_cap <= (64 << 20) else 1
    return vmem_cap, num_tc


def _lane_fold_factor(rows, d):
    """Smallest k with (k*d) % 128 == 0 and rows % k == 0; 1 if none / not needed."""
    if d % _LANE == 0:
        return 1
    k = _LANE // math.gcd(d, _LANE)
    if k > 1 and rows % k == 0:
        return k
    return 1


def _pick_tile_rows(rows, d_padded, dtype, target_block_bytes, num_tc, vmem_budget):
    pack = _sublane_pack(dtype)
    itemsize = jnp.dtype(dtype).itemsize
    row_bytes = max(1, d_padded * itemsize)
    # Biggest sublane-aligned tile near the target block size (mem-bound:
    # large blocks amortize the ~0.35 us per-grid-step overhead).
    tile = max(pack, (target_block_bytes // row_bytes) // pack * pack)
    # Never exceed the VMEM budget: double-buffered x + out blocks (4x block).
    max_tile_vmem = max(pack, (vmem_budget // (4 * row_bytes)) // pack * pack)
    tile = min(tile, max_tile_vmem)
    if num_tc > 1 and rows > pack:
        # Round block count up to a multiple of the TC count so megacore
        # sharding gives each TensorCore (nearly) equal work.
        nblocks = pl.cdiv(pl.cdiv(rows, tile), num_tc) * num_tc
        tile = max(pack, pl.cdiv(pl.cdiv(rows, nblocks), pack) * pack)
        tile = min(tile, max_tile_vmem)
    # A block dim equal to the full array dim is legal even if not pack-aligned.
    return min(tile, rows)


def layer_scale(x, gamma, *, tile_rows=None, target_block_bytes=None):
    """LayerScale forward: x * gamma with gamma (D,) broadcast over the last axis."""
    orig_shape = x.shape
    d = orig_shape[-1]
    rows = 1
    for s in orig_shape[:-1]:
        rows *= s

    # Lane-dense folding for narrow / non-128-multiple D.
    k = _lane_fold_factor(rows, d)
    rows_f = rows // k
    d_f = d * k

    x2 = x.reshape(rows_f, d_f)                                # free layout view
    gamma2 = jnp.tile(gamma.reshape(1, d), (1, k))             # (1, d_f), keeps dtype

    itemsize = jnp.dtype(x.dtype).itemsize
    pack = _sublane_pack(x.dtype)
    d_padded = pl.cdiv(d_f, _LANE) * _LANE                     # VMEM lane padding

    vmem_cap, num_tc = _tpu_memory_profile()
    big_vmem = vmem_cap >= (96 << 20)                          # v5e / v6e class
    if target_block_bytes is None:
        target_block_bytes = (16 << 20) if big_vmem else (8 << 20)
    vmem_cap_limit = (96 << 20) if big_vmem else (48 << 20)
    vmem_budget = vmem_cap_limit - (8 << 20)                   # headroom for scratch

    if tile_rows is None:
        tile = _pick_tile_rows(rows_f, d_padded, x.dtype, target_block_bytes,
                               num_tc, vmem_budget)
    else:
        tile = max(pack, (tile_rows // pack) * pack)
        max_tile_vmem = max(pack, (vmem_budget // (4 * max(1, d_padded * itemsize)))
                            // pack * pack)
        tile = min(tile, max_tile_vmem, rows_f)

    grid = (pl.cdiv(rows_f, tile),)

    # Double-buffered x + out blocks (lane-padded), gamma, + compiler headroom.
    block_bytes = tile * d_padded * itemsize
    gamma_bytes = 2 * 8 * d_padded * jnp.dtype(gamma.dtype).itemsize
    vmem_needed = 2 * (2 * block_bytes) + gamma_bytes + (4 << 20)
    vmem_limit = int(min(max(vmem_needed, 16 << 20), vmem_cap_limit))

    out = pl.pallas_call(
        _layerscale_kernel,
        out_shape=jax.ShapeDtypeStruct((rows_f, d_f), x.dtype),
        grid_spec=pltpu.PrefetchScalarGridSpec(
            num_scalar_prefetch=0,
            grid=grid,
            in_specs=[
                pl.BlockSpec((tile, d_f), lambda i: (i, 0)),
                pl.BlockSpec((1, d_f), lambda i: (0, 0)),
            ],
            out_specs=pl.BlockSpec((tile, d_f), lambda i: (i, 0)),
        ),
        compiler_params=pltpu.CompilerParams(
            dimension_semantics=("parallel",),
            vmem_limit_bytes=vmem_limit,
        ),
    )(x2, gamma2)

    return out.reshape(orig_shape)


if __name__ == "__main__":
    # Matches nn.Parameter(init_values * torch.ones(dim)).
    init_values = 1e-5
    key = jax.random.PRNGKey(0)

    # Case 1: typical (B, N, D) ViT layout at small shapes; D=32 exercises the
    # lane-folding path (k=4 -> blocks of lane width 128).
    B, N, D = 2, 8, 32
    gamma = init_values * jnp.ones((D,), dtype=jnp.float32)
    x = jax.random.normal(key, (B, N, D), dtype=jnp.float32)
    y = jax.block_until_ready(layer_scale(x, gamma))
    ref = x * gamma
    assert y.shape == x.shape and y.dtype == x.dtype
    assert jnp.allclose(y, ref, atol=1e-6, rtol=1e-6)

    # Case 2: D already a multiple of 128 with a ragged row count, exercising
    # the masked tail block (no pad/slice round trip).
    B2, N2, D2 = 1, 20, 128
    gamma2 = init_values * jnp.ones((D2,), dtype=jnp.float32)
    x2 = jax.random.normal(jax.random.PRNGKey(1), (B2, N2, D2), dtype=jnp.float32)
    y2 = jax.block_until_ready(layer_scale(x2, gamma2))
    ref2 = x2 * gamma2
    assert y2.shape == x2.shape
    assert jnp.allclose(y2, ref2, atol=1e-6, rtol=1e-6)

    # Case 3: narrow D that cannot be lane-folded (rows % k != 0) — falls back
    # to the full-array lane dim with masked stores.
    B3, N3, D3 = 2, 3, 48
    gamma3 = init_values * jnp.ones((D3,), dtype=jnp.float32)
    x3 = jax.random.normal(jax.random.PRNGKey(2), (B3, N3, D3), dtype=jnp.float32)
    y3 = jax.block_until_ready(layer_scale(x3, gamma3))
    ref3 = x3 * gamma3
    assert y3.shape == x3.shape
    assert jnp.allclose(y3, ref3, atol=1e-6, rtol=1e-6)

    print("KERNEL_OK")
</pallas_src>

<mosaic_0001>
module attributes {stable_mosaic.version = 11 : i64} {
  func.func @_layerscale_kernel(%arg0: i32, %arg1: memref<4x128xf32, #tpu.memory_space<vmem>>, %arg2: memref<1x128xf32, #tpu.memory_space<vmem>>, %arg3: memref<4x128xf32, #tpu.memory_space<vmem>>) attributes {dimension_semantics = [#tpu.dimension_semantics<parallel>], iteration_bounds = array<i64: 1>, scalar_prefetch = 0 : i64, scratch_operands = 0 : i64, tpu.core_type = #tpu.core_type<tc>, window_params = [{transform_indices = @transform_0, window_bounds = array<i64: 4, 128>}, {pipeline_mode = #tpu.pipeline_mode<synchronous>, transform_indices = @transform_1, window_bounds = array<i64: 1, 128>}, {transform_indices = @transform_2, window_bounds = array<i64: 4, 128>}]} {
    %c0 = arith.constant 0 : index
    %c0_0 = arith.constant 0 : index
    %0 = vector.load %arg1[%c0, %c0_0] : memref<4x128xf32, #tpu.memory_space<vmem>>, vector<4x128xf32>
    %c0_1 = arith.constant 0 : index
    %c0_2 = arith.constant 0 : index
    %1 = vector.load %arg2[%c0_1, %c0_2] : memref<1x128xf32, #tpu.memory_space<vmem>>, vector<1x128xf32>
    %2 = vector.broadcast %1 : vector<1x128xf32> to vector<4x128xf32>
    %3 = arith.mulf %0, %2 : vector<4x128xf32>
    %c0_3 = arith.constant 0 : index
    %c0_4 = arith.constant 0 : index
    %4 = vector.load %arg3[%c0_3, %c0_4] : memref<4x128xf32, #tpu.memory_space<vmem>>, vector<4x128xf32>
    tpu.vector_store %arg3[%c0_3, %c0_4], %3 {strides = array<i32>} : memref<4x128xf32, #tpu.memory_space<vmem>>, vector<4x128xf32>,
    return
  }
  func.func @transform_0(%arg0: i32) -> (i32, i32) {
    %c0_i32 = arith.constant 0 : i32
    %c0_i32_0 = arith.constant 0 : i32
    return %arg0, %c0_i32 : i32, i32
  }
  func.func @transform_1(%arg0: i32) -> (i32, i32) {
    %c0_i32 = arith.constant 0 : i32
    %c0_i32_0 = arith.constant 0 : i32
    %c0_i32_1 = arith.constant 0 : i32
    return %c0_i32, %c0_i32_0 : i32, i32
  }
  func.func @transform_2(%arg0: i32) -> (i32, i32) {
    %c0_i32 = arith.constant 0 : i32
    %c0_i32_0 = arith.constant 0 : i32
    return %arg0, %c0_i32 : i32, i32
  }
}

</mosaic_0001>

<bundles_post_ra>
// kernel: tpu_custom_call.1
= control target key start
LH: loop header
LB: loop body
LE: loop exit
PB: predicated region body
PF: predicated region fallthrough
CT: control target
= control target key end

     0   :  { %7 = vsyncpa [#allocation3], 0  ;;  %s122_s0 = inlined_call_operand.hbm [shape: f32[4,128], index: 0, kind: input, shape index: {}]   ;;  %s123_s1 = inlined_call_operand.vmem [shape: f32[1,128], index: 1, kind: input, shape index: {}]   ;;  %s124_s2 = inlined_call_operand.hbm [shape: f32[4,128], index: 2, kind: output, shape index: {}]  }
   0x1   :  { %8 = vsyncpa [#allocation4], 0  ;;  %s96_s9 = smov [#allocation2]  }
   0x2   :  { %s15_s10 = sshll.u32 %s96_s9, 4  ;;  %s16_s10 = int_to_ptr.vmem [resolvable:$true] %s15_s10 }
   0x3   :  { %s60_s11 = scalar_lea.vmem %s16_s10, 64  ;;  %p65_p1 = scmp.lt.s32.totalorder %s16_s10, %s16_s10 }
   0x4   :  { %p61_p0 = scmp.ne.s32.totalorder %s16_s10, %s60_s11  ;;  %p66_p2 = scmp.lt.s32.totalorder %s60_s11, %s60_s11 }
   0x6   :  { %p67_p3 = por %p66_p2, %p65_p1 }
   0x8   :  { %p68_p4 = pnand %p67_p3, %p61_p0 }
   0xa   :  { %71 = shalt.err (!%p68_p4)
}
   0xb   :  { %18 = dma.hbm_to_vmem [thread:$0]  %s122_s0, 64, %s16_s10, [#allocation3]  }
   0xc   :  { %92 = dma.done.wait [#allocation3], 64  }
   0xd   :  { %93 = vsyncadd [#allocation3], 4294967232  ;;  %s97_s14 = smov [#allocation5]   ;;  %v24_v0 = vld [vmem:[#allocation2] sm:$0xf] }
   0xe   :  { %s40_s15 = sshll.u32 %s97_s14, 4  ;;  %v49_v1 = vld [vmem:[%s123_s1] ss:$0 sm:$0xff]  ;;  %s41_s15 = int_to_ptr.vmem [resolvable:$true] %s40_s15 }
   0xf   :  { %v32_v2 = vmul.f32 %v49_v1, %v24_v0  ;;  %s72_s18 = scalar_lea.vmem %s41_s15, 64  ;;  %p77_p6 = scmp.lt.s32.totalorder %s41_s15, %s41_s15 }
  0x10   :  { %p73_p5 = scmp.ne.s32.totalorder %s41_s15, %s72_s18  ;;  %p78_p7 = scmp.lt.s32.totalorder %s72_s18, %s72_s18 }
  0x11   :  { %33 = vst [vmem:[#allocation5] sm:$0xf] %v32_v2 }
  0x12   :  { %p79_p8 = por %p78_p7, %p77_p6 }
  0x14   :  { %p80_p9 = pnand %p79_p8, %p73_p5 }
  0x16   :  { %83 = shalt.err (!%p80_p9)
}
  0x17   :  { %43 = dma.vmem_to_hbm [thread:$0]  %s41_s15, 64, %s124_s2, [#allocation4]  }
  0x18   :  { %94 = dma.done.wait [#allocation4], 64  }
  0x19   :  { %95 = vsyncadd [#allocation4], 4294967232 }
  0x1a   :  { %47 = vsyncpa [#allocation3], 1 }
  0x1b   :  { %48 = vsyncpa [#allocation4], 1 }

</bundles_post_ra>
